<compile_context>
chip_gen: v6e
topology: v6e:2x2x1
jax: 0.10.0
libtpu: 0.0.40
codegen_flags: <defaults>
</compile_context>

<pallas_src>
import jax
import jax.numpy as jnp
from jax.experimental import pallas as pl
from jax.experimental.pallas import tpu as pltpu


def beale_kernel(p_ref, o_ref):
    # p_ref: SMEM (2,) float32   o_ref: SMEM (1,) float32
    x = p_ref[0] + 3.0
    y = p_ref[1] + 0.5
    xy = x * y
    yy = y * y
    t1 = 1.5 - x + xy            # 1.5   - x + x*y
    t2 = 2.25 - x + xy * y       # 2.25  - x + x*y^2
    t3 = 2.625 - x + xy * yy     # 2.625 - x + x*y^3
    o_ref[0] = t1 * t1 + t2 * t2 + t3 * t3


_beale_call = pl.pallas_call(
    beale_kernel,
    out_shape=jax.ShapeDtypeStruct((1,), jnp.float32),
    in_specs=[pl.BlockSpec(memory_space=pltpu.MemorySpace.SMEM)],
    out_specs=pl.BlockSpec(memory_space=pltpu.MemorySpace.SMEM),
    # ~15 flops, 8 bytes in + 4 bytes out: negligible for XLA's scheduler.
    cost_estimate=pl.CostEstimate(flops=15, transcendentals=0, bytes_accessed=12),
)


@jax.jit
def beale_forward(param: jax.Array) -> jax.Array:
    """Pallas equivalent of Model.forward(): objective(*param) -> scalar."""
    if param.dtype != jnp.float32:
        param = param.astype(jnp.float32)
    out = _beale_call(param)
    return out[0]  # forward() returns a scalar; squeeze fuses inside this jit


def beale_ref(param: jax.Array) -> jax.Array:
    """Pure-jnp reference (matches the PyTorch `objective`)."""
    x = param[0] + 3.0
    y = param[1] + 0.5
    return ((1.5 - x + x * y) ** 2
            + (2.25 - x + x * y ** 2) ** 2
            + (2.625 - x + x * y ** 3) ** 2)


if __name__ == "__main__":
    # Deterministic stand-in for nn.Parameter(torch.tensor(x).float()): a
    # 2-element float32 vector [x0, y0].
    key = jax.random.PRNGKey(0)
    param = jax.random.normal(key, (2,), dtype=jnp.float32)

    result = jax.block_until_ready(beale_forward(param))
    expected = beale_ref(param)

    assert result.shape == (), result.shape
    assert jnp.allclose(result, expected, rtol=1e-5, atol=1e-5), (result, expected)
    print("KERNEL_OK")
</pallas_src>

<mosaic_0001>
module attributes {stable_mosaic.version = 11 : i64} {
  func.func @beale_kernel(%arg0: memref<2xf32, #tpu.memory_space<smem>>, %arg1: memref<1xf32, #tpu.memory_space<smem>>) attributes {dimension_semantics = [], scalar_prefetch = 0 : i64, scratch_operands = 0 : i64, tpu.core_type = #tpu.core_type<tc>} {
    %c0 = arith.constant 0 : index
    %0 = memref.load %arg0[%c0] : memref<2xf32, #tpu.memory_space<smem>>
    %cst = arith.constant 3.000000e+00 : f32
    %1 = arith.addf %0, %cst : f32
    %c1 = arith.constant 1 : index
    %2 = memref.load %arg0[%c1] : memref<2xf32, #tpu.memory_space<smem>>
    %cst_0 = arith.constant 5.000000e-01 : f32
    %3 = arith.addf %2, %cst_0 : f32
    %4 = arith.mulf %1, %3 : f32
    %5 = arith.mulf %3, %3 : f32
    %cst_1 = arith.constant 1.500000e+00 : f32
    %6 = arith.subf %cst_1, %1 : f32
    %7 = arith.addf %6, %4 : f32
    %cst_2 = arith.constant 2.250000e+00 : f32
    %8 = arith.subf %cst_2, %1 : f32
    %9 = arith.mulf %4, %3 : f32
    %10 = arith.addf %8, %9 : f32
    %cst_3 = arith.constant 2.625000e+00 : f32
    %11 = arith.subf %cst_3, %1 : f32
    %12 = arith.mulf %4, %5 : f32
    %13 = arith.addf %11, %12 : f32
    %14 = arith.mulf %7, %7 : f32
    %15 = arith.mulf %10, %10 : f32
    %16 = arith.addf %14, %15 : f32
    %17 = arith.mulf %13, %13 : f32
    %18 = arith.addf %16, %17 : f32
    %c0_4 = arith.constant 0 : index
    %19 = memref.load %arg1[%c0_4] : memref<1xf32, #tpu.memory_space<smem>>
    memref.store %18, %arg1[%c0_4] : memref<1xf32, #tpu.memory_space<smem>>
    return
  }
}

</mosaic_0001>

<bundles_post_ra>
// kernel: beale_forward.1
= control target key start
LH: loop header
LB: loop body
LE: loop exit
PB: predicated region body
PF: predicated region fallthrough
CT: control target
= control target key end

     0   :  { %6 = vsyncpa [#allocation3], 0  ;;  %s96_s0 = inlined_call_operand.hbm [shape: f32[2], index: 0, kind: input, shape index: {}]   ;;  %s97_s1 = inlined_call_operand.hbm [shape: f32[1], index: 1, kind: output, shape index: {}]  }
   0x1   :  { %7 = vsyncpa [#allocation4], 0  ;;  %s78_s6 = smov [#allocation2]  }
   0x2   :  { %15 = dma.hbm_to_smem %s96_s0, 16, %s78_s6, [#allocation3]  }
   0x3   :  { %74 = dma.done.wait [#allocation3], 16  }
   0x4   :  { %75 = vsyncadd [#allocation3], 4294967280 }
   0x5   :  { %19 = sfence }
   0x6   :  { %s20_s9 = sld [smem:[#allocation2]]  ;;  %s79_s27 = smov [#allocation5]  }
   0x7   :  { %s55_s10 = sld [smem:[#allocation2 + $0x1]] }
   0xc   :  { %s21_s11 = sadd.f32 3.0, %s20_s9 }
   0xd   :  { %s23_s12 = sadd.f32 0.5, %s55_s10 }
   0xe   :  { %s26_s13 = ssub.f32 1.5, %s21_s11 }
   0xf   :  { %s24_s14 = smul.f32 %s23_s12, %s21_s11  ;;  %s28_s15 = ssub.f32 2.25, %s21_s11 }
  0x10   :  { %s25_s16 = smul.f32 %s23_s12, %s23_s12  ;;  %s31_s17 = ssub.f32 2.625, %s21_s11 }
  0x11   :  { %s27_s18 = sadd.f32 %s26_s13, %s24_s14  ;;  %s29_s19 = smul.f32 %s24_s14, %s23_s12 }
  0x12   :  { %s32_s20 = smul.f32 %s25_s16, %s24_s14 }
  0x13   :  { %s30_s21 = sadd.f32 %s29_s19, %s28_s15  ;;  %s34_s22 = smul.f32 %s27_s18, %s27_s18 }
  0x14   :  { %s33_s23 = sadd.f32 %s32_s20, %s31_s17 }
  0x15   :  { %s35_s24 = smul.f32 %s30_s21, %s30_s21 }
  0x16   :  { %s37_s0 = smul.f32 %s33_s23, %s33_s23 }
  0x17   :  { %s36_s25 = sadd.f32 %s35_s24, %s34_s22 }
  0x19   :  { %s38_s26 = sadd.f32 %s37_s0, %s36_s25 }
  0x1b   :  { %40 = sst [smem:[#allocation5]] %s38_s26 }
  0x1c   :  { %48 = dma.smem_to_hbm %s79_s27, 16, %s97_s1, [#allocation4]  }
  0x1d   :  { %76 = dma.done.wait [#allocation4], 16  }
  0x1e   :  { %77 = vsyncadd [#allocation4], 4294967280 }
  0x1f   :  { %52 = sfence }
  0x20   :  { %53 = vsyncpa [#allocation3], 1 }
  0x21   :  { %54 = vsyncpa [#allocation4], 1 }

</bundles_post_ra>
